<compile_context>
chip_gen: v7x
topology: tpu7x:2x2x1
jax: 0.10.0
libtpu: 0.0.40
codegen_flags: <defaults>
</compile_context>

<pallas_src>
import functools

import jax
import jax.numpy as jnp
import numpy as np
from jax.experimental import pallas as pl
from jax.experimental.pallas import tpu as pltpu


def _round_up(x, m):
    return ((x + m - 1) // m) * m


def patch_embed_kernel(x_ref, w_ref, b_ref, o_ref):
    # x_ref: (block_m, K), w_ref: (K, block_n), b_ref: (1, block_n), o_ref: (block_m, block_n)
    acc = jnp.dot(x_ref[...], w_ref[...], preferred_element_type=jnp.float32)
    acc = acc + b_ref[...].astype(jnp.float32)
    o_ref[...] = acc.astype(o_ref.dtype)


@functools.partial(
    jax.jit,
    static_argnames=("spatial_patch_size", "temporal_patch_size", "block_m_max", "block_n_max"),
)
def patch_embed_forward(x, w_kd, bias_d, *, spatial_patch_size, temporal_patch_size,
                        block_m_max=1024, block_n_max=1024):
    """PatchEmbed forward.

    x:      (B, C, T, H, W)
    w_kd:   (K, D) = PyTorch Linear weight.T, K = C*r*m*n
    bias_d: (D,)
    returns (B, T//r, H//m, W//n, D)
    """
    B, C, T, H, W = x.shape
    r = temporal_patch_size
    m = spatial_patch_size
    n = spatial_patch_size
    assert T % r == 0 and H % m == 0 and W % n == 0
    Tp, Hp, Wp = T // r, H // m, W // n
    K = C * r * m * n
    D = w_kd.shape[1]
    assert w_kd.shape == (K, D) and bias_d.shape == (D,)

    # Rearrange 'b c (t r) (h m) (w n) -> (b t h w) (c r m n)' — one layout pass in the
    # wrapper (fused under this jit); the kernel then sees a dense (M, K) patch matrix.
    xr = x.reshape(B, C, Tp, r, Hp, m, Wp, n)
    xr = xr.transpose(0, 2, 4, 6, 1, 3, 5, 7)          # b t h w c r m n
    M = B * Tp * Hp * Wp
    xr = xr.reshape(M, K)

    # Safety net only: pad K to a multiple of 8 (zeros contribute 0 to the matmul).
    # No-op for typical PatchEmbed configs (K = C*r*m*m is already a multiple of 8).
    if K % 8 != 0:
        K_pad = _round_up(K, 8)
        xr = jnp.pad(xr, ((0, 0), (0, K_pad - K)))
        w_kd = jnp.pad(w_kd, ((0, K_pad - K), (0, 0)))
        K = K_pad

    b2 = bias_d.reshape(1, D)

    # M tiling: full-extent block when small (exempt from the 8-rule), otherwise large
    # 8-aligned blocks; pl.cdiv handles a masked partial trailing block, so no M padding
    # and no output slice copy.
    block_m = M if M <= block_m_max else block_m_max
    # D tiling: lane-dense 128-multiple blocks when D % 128 == 0 (unmasked vst);
    # otherwise a single full-D block (masked stores) — never pad, never slice.
    block_n = min(D, block_n_max) if D % 128 == 0 else D

    grid = (pl.cdiv(M, block_m), pl.cdiv(D, block_n))   # N innermost: x block re-used across j

    x_bytes = jnp.dtype(x.dtype).itemsize
    w_bytes = jnp.dtype(w_kd.dtype).itemsize
    cost = pl.CostEstimate(
        flops=2 * M * K * D,
        transcendentals=0,
        bytes_accessed=M * K * x_bytes + K * D * w_bytes + D * w_bytes + M * D * x_bytes,
    )

    out = pl.pallas_call(
        patch_embed_kernel,
        out_shape=jax.ShapeDtypeStruct((M, D), x.dtype),
        grid=grid,
        in_specs=[
            pl.BlockSpec((block_m, K), lambda i, j: (i, 0)),   # patch rows; constant over j
            pl.BlockSpec((K, block_n), lambda i, j: (0, j)),   # weight column block
            pl.BlockSpec((1, block_n), lambda i, j: (0, j)),   # bias column block
        ],
        out_specs=pl.BlockSpec((block_m, block_n), lambda i, j: (i, j)),
        compiler_params=pltpu.CompilerParams(
            dimension_semantics=("parallel", "parallel"),   # both axes shard across TCs (v7x)
            vmem_limit_bytes=32 * 1024 * 1024,               # safe on v5e/v6e/v7x; blocks use ~10 MiB max
        ),
        cost_estimate=cost,
    )(xr, w_kd, b2)

    return out.reshape(B, Tp, Hp, Wp, D)


if __name__ == "__main__":
    # Small config consistent with PatchEmbed.__init__ / forward.
    spatial_patch_size = 2
    temporal_patch_size = 2
    in_channels = 3
    out_channels = 256                      # lane-dense D (multiple of 128), still small

    B, C, T, H, W = 2, in_channels, 4, 16, 16
    K = in_channels * temporal_patch_size * spatial_patch_size * spatial_patch_size  # 24

    key = jax.random.PRNGKey(0)
    k1, k2, k3 = jax.random.split(key, 3)
    x = jax.random.normal(k1, (B, C, T, H, W), jnp.float32)
    # Deterministic synthetic weights, stored as (in, out) = PyTorch weight.T
    w = jax.random.normal(k2, (K, out_channels), jnp.float32) * 0.02
    b = jax.random.normal(k3, (out_channels,), jnp.float32) * 0.02

    out = patch_embed_forward(x, w, b,
                              spatial_patch_size=spatial_patch_size,
                              temporal_patch_size=temporal_patch_size)
    jax.block_until_ready(out)

    # Plain-JAX reference (mirrors the einops rearrange + Linear).
    Tp, Hp, Wp = T // temporal_patch_size, H // spatial_patch_size, W // spatial_patch_size
    xr = x.reshape(B, C, Tp, temporal_patch_size, Hp, spatial_patch_size, Wp, spatial_patch_size)
    xr = xr.transpose(0, 2, 4, 6, 1, 3, 5, 7).reshape(B, Tp, Hp, Wp, K)
    ref = xr @ w + b

    assert out.shape == (B, Tp, Hp, Wp, out_channels)
    assert np.allclose(np.asarray(out), np.asarray(ref), atol=1e-4, rtol=1e-4)
    print("KERNEL_OK")
</pallas_src>

<mosaic_0001>
module attributes {stable_mosaic.version = 11 : i64} {
  func.func @patch_embed_kernel(%arg0: i32, %arg1: i32, %arg2: memref<256x24xf32, #tpu.memory_space<vmem>>, %arg3: memref<24x256xf32, #tpu.memory_space<vmem>>, %arg4: memref<1x256xf32, #tpu.memory_space<vmem>>, %arg5: memref<256x256xf32, #tpu.memory_space<vmem>>) attributes {dimension_semantics = [#tpu.dimension_semantics<parallel>, #tpu.dimension_semantics<parallel>], iteration_bounds = array<i64: 1, 1>, scalar_prefetch = 0 : i64, scratch_operands = 0 : i64, tpu.core_type = #tpu.core_type<tc>, window_params = [{transform_indices = @transform_0, window_bounds = array<i64: 256, 24>}, {transform_indices = @transform_1, window_bounds = array<i64: 24, 256>}, {transform_indices = @transform_2, window_bounds = array<i64: 1, 256>}, {transform_indices = @transform_3, window_bounds = array<i64: 256, 256>}]} {
    %c0 = arith.constant 0 : index
    %c0_0 = arith.constant 0 : index
    %0 = vector.load %arg2[%c0, %c0_0] : memref<256x24xf32, #tpu.memory_space<vmem>>, vector<256x24xf32>
    %c0_1 = arith.constant 0 : index
    %c0_2 = arith.constant 0 : index
    %1 = vector.load %arg3[%c0_1, %c0_2] : memref<24x256xf32, #tpu.memory_space<vmem>>, vector<24x256xf32>
    %cst = arith.constant dense<0.000000e+00> : vector<256x256xf32>
    %2 = tpu.matmul %0, %1, %cst {dimension_numbers = #tpu.dot_dimension_numbers<[1], [0], [0], [1], [0, 0, 1, 1], [], []>} : vector<256x24xf32>, vector<24x256xf32>, vector<256x256xf32> -> vector<256x256xf32>
    %c0_3 = arith.constant 0 : index
    %c0_4 = arith.constant 0 : index
    %3 = vector.load %arg4[%c0_3, %c0_4] : memref<1x256xf32, #tpu.memory_space<vmem>>, vector<1x256xf32>
    %4 = vector.broadcast %3 : vector<1x256xf32> to vector<256x256xf32>
    %5 = arith.addf %2, %4 : vector<256x256xf32>
    %c0_5 = arith.constant 0 : index
    %c0_6 = arith.constant 0 : index
    %6 = vector.load %arg5[%c0_5, %c0_6] : memref<256x256xf32, #tpu.memory_space<vmem>>, vector<256x256xf32>
    tpu.vector_store %arg5[%c0_5, %c0_6], %5 {strides = array<i32>} : memref<256x256xf32, #tpu.memory_space<vmem>>, vector<256x256xf32>,
    return
  }
  func.func @transform_0(%arg0: i32, %arg1: i32) -> (i32, i32) {
    %c0_i32 = arith.constant 0 : i32
    %c0_i32_0 = arith.constant 0 : i32
    return %arg0, %c0_i32 : i32, i32
  }
  func.func @transform_1(%arg0: i32, %arg1: i32) -> (i32, i32) {
    %c0_i32 = arith.constant 0 : i32
    %c0_i32_0 = arith.constant 0 : i32
    return %c0_i32, %arg1 : i32, i32
  }
  func.func @transform_2(%arg0: i32, %arg1: i32) -> (i32, i32) {
    %c0_i32 = arith.constant 0 : i32
    %c0_i32_0 = arith.constant 0 : i32
    return %c0_i32, %arg1 : i32, i32
  }
  func.func @transform_3(%arg0: i32, %arg1: i32) -> (i32, i32) {
    %c0_i32 = arith.constant 0 : i32
    return %arg0, %arg1 : i32, i32
  }
}

</mosaic_0001>

<bundles_post_ra>
// kernel: patch_embed_forward.1
= control target key start
LH: loop header
LB: loop body
LE: loop exit
PB: predicated region body
PF: predicated region fallthrough
CT: control target
= control target key end

     0   :  { %v567_v5 = vmov 0.0   ;;  %vm65_vm0 = vcmask 195584   ;;  %s852_s0 = inlined_call_operand.vmem [shape: f32[256,24], index: 0, kind: input, shape index: {}]   ;;  %s853_s1 = inlined_call_operand.vmem [shape: f32[24,256], index: 1, kind: input, shape index: {}]   ;;  %s854_s2 = inlined_call_operand.vmem [shape: f32[1,256], index: 2, kind: input, shape index: {}]   ;;  %s855_s3 = inlined_call_operand.hbm [shape: f32[256,256], index: 3, kind: output, shape index: {}]  }
   0x1   :  { %v48_v0 = vld [vmem:[%s853_s1 + $0x8] sm:$0xff]  ;;  %v50_v1 = vld [vmem:[%s853_s1 + $0x18] sm:$0xff]  ;;  %v47_v2 = vld [vmem:[%s853_s1] sm:$0xff]  ;;  %226 = vmatprep.mubr.f32.mxu0 %v567_v5  ;;  %322 = vmatprep.mubr.f32.mxu1 %v567_v5 }
   0x2   :  { %v531_v3 = vpack.c.bf16 %v50_v1, %v48_v0  ;;  %v49_v4 = vld [vmem:[%s853_s1 + $0x10] sm:$0xff]  ;;  %v52_v7 = vld [vmem:[%s853_s1 + $0x28] sm:$0xff]  ;;  %v51_v8 = vld [vmem:[%s853_s1 + $0x20] sm:$0xff] }
   0x3   :  { %v533_v6 = vpack.c.bf16 %v49_v4, %v47_v2  ;;  %v15_v9 = vld [vmem:[%s852_s0] sm:$0xff]  ;;  %v16_v11 = vld [vmem:[%s852_s0 + $0x8] sm:$0xff] }
   0x4   :  { %532 = vmatprep.subr.bf16.mxu0 %v531_v3  ;;  %535 = vmatprep.subr.bf16.mxu1 %v531_v3  ;;  %v31_v10 = vld [vmem:[%s852_s0 + $0x80] sm:$0xff]  ;;  %v32_v12 = vld [vmem:[%s852_s0 + $0x88] sm:$0xff] }
   0x5   :  { %534 = vmatpush1.bf16.msra.mxu0 %v533_v6  ;;  %537 = vmatpush1.bf16.msra.mxu1 %v533_v6 }
   0x6   :  { %166 = vmatprep.subr.mxu0 %v52_v7  ;;  %536 = vmatprep.subr.mxu1 %v52_v7 }
   0x9   :  { %167 = vmatpush1.msra.mxu0 %v51_v8  ;;  %538 = vmatpush1.msra.mxu1 %v51_v8 }
   0xa   :  { %499 = vmatmul.mubr.msk.f32.vlgmr.msra.gmra.mrb[0].mxu0 %vm65_vm0, %v15_v9  ;;  %515 = vmatmul.mubr.msk.f32.vlgmr.msra.gmra.mrb[0].mxu1 %vm65_vm0, %v31_v10 }
   0xb   :  { %232 = vmatprep.mubr.f32.mxu0 %v567_v5  ;;  %328 = vmatprep.mubr.f32.mxu1 %v567_v5 }
   0xe   :  { %500 = vmatmul.mubr.msk.f32.gmra.mrb[2].mxu0 %vm65_vm0, %v16_v11  ;;  %516 = vmatmul.mubr.msk.f32.gmra.mrb[2].mxu1 %vm65_vm0, %v32_v12 }
   0xf   :  { %8 = vsyncpa [#allocation3], 0  ;;  %238 = vmatprep.mubr.f32.mxu0 %v567_v5  ;;  %334 = vmatprep.mubr.f32.mxu1 %v567_v5  ;;  %v17_v13 = vld [vmem:[%s852_s0 + $0x10] sm:$0xff]  ;;  %v18_v15 = vld [vmem:[%s852_s0 + $0x18] sm:$0xff]  ;;  %v55_v41 = vlaneseq }
  0x10   :  { %v33_v14 = vld [vmem:[%s852_s0 + $0x90] sm:$0xff]  ;;  %v34_v16 = vld [vmem:[%s852_s0 + $0x98] sm:$0xff]  ;;  %v19_v17 = vld [vmem:[%s852_s0 + $0x20] sm:$0xff] }
  0x11   :  { %v35_v18 = vld [vmem:[%s852_s0 + $0xa0] sm:$0xff]  ;;  %v20_v19 = vld [vmem:[%s852_s0 + $0x28] sm:$0xff]  ;;  %v21_v21 = vld [vmem:[%s852_s0 + $0x30] sm:$0xff]  ;;  %v56_v42 = vshrl.u32 %v55_v41, 7 }
  0x12   :  { %501 = vmatmul.mubr.msk.f32.gmra.mrb[4].mxu0 %vm65_vm0, %v17_v13  ;;  %517 = vmatmul.mubr.msk.f32.gmra.mrb[4].mxu1 %vm65_vm0, %v33_v14  ;;  %v36_v20 = vld [vmem:[%s852_s0 + $0xa8] sm:$0xff]  ;;  %v37_v22 = vld [vmem:[%s852_s0 + $0xb0] sm:$0xff]  ;;  %v22_v23 = vld [vmem:[%s852_s0 + $0x38] sm:$0xff] }
  0x13   :  { %244 = vmatprep.mubr.f32.mxu0 %v567_v5  ;;  %340 = vmatprep.mubr.f32.mxu1 %v567_v5  ;;  %v38_v24 = vld [vmem:[%s852_s0 + $0xb8] sm:$0xff]  ;;  %v23_v25 = vld [vmem:[%s852_s0 + $0x40] sm:$0xff]  ;;  %v24_v27 = vld [vmem:[%s852_s0 + $0x48] sm:$0xff]  ;;  %v57_v43 = vsub.s32 0, %v56_v42  ;;  %v61_v45 = vsub.s32 1, %v56_v42 }
  0x14   :  { %v39_v26 = vld [vmem:[%s852_s0 + $0xc0] sm:$0xff]  ;;  %v40_v28 = vld [vmem:[%s852_s0 + $0xc8] sm:$0xff]  ;;  %v25_v29 = vld [vmem:[%s852_s0 + $0x50] sm:$0xff] }
  0x15   :  { %v41_v30 = vld [vmem:[%s852_s0 + $0xd0] sm:$0xff]  ;;  %v26_v31 = vld [vmem:[%s852_s0 + $0x58] sm:$0xff]  ;;  %v27_v33 = vld [vmem:[%s852_s0 + $0x60] sm:$0xff] }
  0x16   :  { %502 = vmatmul.mubr.msk.f32.gmra.mrb[6].mxu0 %vm65_vm0, %v18_v15  ;;  %518 = vmatmul.mubr.msk.f32.gmra.mrb[6].mxu1 %vm65_vm0, %v34_v16  ;;  %v42_v32 = vld [vmem:[%s852_s0 + $0xd8] sm:$0xff]  ;;  %v43_v34 = vld [vmem:[%s852_s0 + $0xe0] sm:$0xff]  ;;  %v28_v35 = vld [vmem:[%s852_s0 + $0x68] sm:$0xff] }
  0x17   :  { %250 = vmatprep.mubr.f32.mxu0 %v567_v5  ;;  %346 = vmatprep.mubr.f32.mxu1 %v567_v5  ;;  %v44_v36 = vld [vmem:[%s852_s0 + $0xe8] sm:$0xff]  ;;  %v29_v37 = vld [vmem:[%s852_s0 + $0x70] sm:$0xff]  ;;  %v30_v39 = vld [vmem:[%s852_s0 + $0x78] sm:$0xff] }
  0x18   :  { %v45_v38 = vld [vmem:[%s852_s0 + $0xf0] sm:$0xff]  ;;  %v46_v40 = vld [vmem:[%s852_s0 + $0xf8] sm:$0xff]  ;;  %v53_v44 = vld [vmem:[%s854_s2] sm:$0x3]  ;;  %s568_s0 = smov [#allocation2]  }
  0x19   :  { %v772_v46 = vrot.slane %v53_v44, %v57_v43  ;;  %v774_v47 = vrot.slane %v53_v44, %v61_v45  ;;  %s488_s2 = sshll.u32 %s568_s0, 4  ;;  %s489_s2 = int_to_ptr.vmem [resolvable:$true] %s488_s2 }
  0x1a   :  { %503 = vmatmul.mubr.msk.f32.gmra.mrb[8].mxu0 %vm65_vm0, %v19_v17  ;;  %519 = vmatmul.mubr.msk.f32.gmra.mrb[8].mxu1 %vm65_vm0, %v35_v18  ;;  %s543_s6 = scalar_lea.vmem %s489_s2, 8192  ;;  %p548_p1 = scmp.lt.s32.totalorder %s489_s2, %s489_s2 }
  0x1b   :  { %256 = vmatprep.mubr.f32.mxu0 %v567_v5  ;;  %352 = vmatprep.mubr.f32.mxu1 %v567_v5  ;;  %p544_p0 = scmp.ne.s32.totalorder %s489_s2, %s543_s6  ;;  %p549_p2 = scmp.lt.s32.totalorder %s543_s6, %s543_s6 }
  0x1d   :  { %p550_p3 = por %p549_p2, %p548_p1 }
  0x1e   :  { %504 = vmatmul.mubr.msk.f32.gmra.mrb[10].mxu0 %vm65_vm0, %v20_v19  ;;  %520 = vmatmul.mubr.msk.f32.gmra.mrb[10].mxu1 %vm65_vm0, %v36_v20 }
  0x1f   :  { %262 = vmatprep.mubr.f32.mxu0 %v567_v5  ;;  %358 = vmatprep.mubr.f32.mxu1 %v567_v5  ;;  %p551_p4 = pnand %p550_p3, %p544_p0 }
  0x22   :  { %505 = vmatmul.mubr.msk.f32.gmra.mrb[12].mxu0 %vm65_vm0, %v21_v21  ;;  %521 = vmatmul.mubr.msk.f32.gmra.mrb[12].mxu1 %vm65_vm0, %v37_v22 }
  0x23   :  { %268 = vmatprep.mubr.f32.mxu0 %v567_v5  ;;  %364 = vmatprep.mubr.f32.mxu1 %v567_v5 }
  0x26   :  { %506 = vmatmul.mubr.msk.f32.gmra.mrb[14].mxu0 %vm65_vm0, %v22_v23  ;;  %522 = vmatmul.mubr.msk.f32.gmra.mrb[14].mxu1 %vm65_vm0, %v38_v24 }
  0x27   :  { %274 = vmatprep.mubr.f32.mxu0 %v567_v5  ;;  %370 = vmatprep.mubr.f32.mxu1 %v567_v5 }
  0x2a   :  { %507 = vmatmul.mubr.msk.f32.gmra.mrb[16].mxu0 %vm65_vm0, %v23_v25  ;;  %523 = vmatmul.mubr.msk.f32.gmra.mrb[16].mxu1 %vm65_vm0, %v39_v26 }
  0x2b   :  { %280 = vmatprep.mubr.f32.mxu0 %v567_v5  ;;  %376 = vmatprep.mubr.f32.mxu1 %v567_v5 }
  0x2e   :  { %508 = vmatmul.mubr.msk.f32.gmra.mrb[18].mxu0 %vm65_vm0, %v24_v27  ;;  %524 = vmatmul.mubr.msk.f32.gmra.mrb[18].mxu1 %vm65_vm0, %v40_v28 }
  0x2f   :  { %286 = vmatprep.mubr.f32.mxu0 %v567_v5  ;;  %382 = vmatprep.mubr.f32.mxu1 %v567_v5 }
  0x32   :  { %509 = vmatmul.mubr.msk.f32.gmra.mrb[20].mxu0 %vm65_vm0, %v25_v29  ;;  %525 = vmatmul.mubr.msk.f32.gmra.mrb[20].mxu1 %vm65_vm0, %v41_v30 }
  0x33   :  { %292 = vmatprep.mubr.f32.mxu0 %v567_v5  ;;  %388 = vmatprep.mubr.f32.mxu1 %v567_v5 }
  0x36   :  { %510 = vmatmul.mubr.msk.f32.gmra.mrb[22].mxu0 %vm65_vm0, %v26_v31  ;;  %526 = vmatmul.mubr.msk.f32.gmra.mrb[22].mxu1 %vm65_vm0, %v42_v32 }
  0x37   :  { %298 = vmatprep.mubr.f32.mxu0 %v567_v5  ;;  %394 = vmatprep.mubr.f32.mxu1 %v567_v5 }
  0x3a   :  { %511 = vmatmul.mubr.msk.f32.gmra.mrb[24].mxu0 %vm65_vm0, %v27_v33  ;;  %527 = vmatmul.mubr.msk.f32.gmra.mrb[24].mxu1 %vm65_vm0, %v43_v34 }
  0x3b   :  { %304 = vmatprep.mubr.f32.mxu0 %v567_v5  ;;  %400 = vmatprep.mubr.f32.mxu1 %v567_v5 }
  0x3e   :  { %512 = vmatmul.mubr.msk.f32.gmra.mrb[26].mxu0 %vm65_vm0, %v28_v35  ;;  %528 = vmatmul.mubr.msk.f32.gmra.mrb[26].mxu1 %vm65_vm0, %v44_v36 }
  0x3f   :  { %310 = vmatprep.mubr.f32.mxu0 %v567_v5  ;;  %406 = vmatprep.mubr.f32.mxu1 %v567_v5 }
  0x42   :  { %513 = vmatmul.mubr.msk.f32.gmra.mrb[28].mxu0 %vm65_vm0, %v29_v37  ;;  %529 = vmatmul.mubr.msk.f32.gmra.mrb[28].mxu1 %vm65_vm0, %v45_v38 }
  0x43   :  { %316 = vmatprep.mubr.f32.mxu0 %v567_v5  ;;  %412 = vmatprep.mubr.f32.mxu1 %v567_v5 }
  0x46   :  { %514 = vmatmul.mubr.msk.f32.gmra.mrb[30].mxu0 %vm65_vm0, %v30_v39  ;;  %530 = vmatmul.mubr.msk.f32.gmra.mrb[30].mxu1 %vm65_vm0, %v46_v40 }
  0xdd   :  { %v228_v48 = vpop.f32.mrb[0].mxu0  ;;  %v324_v49 = vpop.f32.mrb[0].mxu1 }
  0xde   :  { %v229_v50 = vadd.f32 %v228_v48, %v772_v46  ;;  %v325_v51 = vadd.f32 %v324_v49, %v772_v46  ;;  %v230_v52 = vpop.f32.mrb[1].mxu0  ;;  %v326_v53 = vpop.f32.mrb[1].mxu1 }
  0xdf   :  { %v231_v54 = vadd.f32 %v230_v52, %v774_v47  ;;  %v327_v55 = vadd.f32 %v326_v53, %v774_v47 }
  0xe0   :  { %419 = vst [vmem:[#allocation2] sm:$0xff] %v229_v50  ;;  %451 = vst [vmem:[#allocation2 + $0x100] sm:$0xff] %v325_v51 }
  0xe1   :  { %420 = vst [vmem:[#allocation2 + $0x8] sm:$0xff] %v231_v54  ;;  %452 = vst [vmem:[#allocation2 + $0x108] sm:$0xff] %v327_v55  ;;  %v234_v56 = vpop.f32.mrb[2].mxu0  ;;  %v330_v57 = vpop.f32.mrb[2].mxu1 }
  0xe2   :  { %v235_v58 = vadd.f32 %v234_v56, %v772_v46  ;;  %v331_v59 = vadd.f32 %v330_v57, %v772_v46  ;;  %v236_v60 = vpop.f32.mrb[3].mxu0  ;;  %v332_v61 = vpop.f32.mrb[3].mxu1 }
  0xe3   :  { %v237_v62 = vadd.f32 %v236_v60, %v774_v47  ;;  %v333_v63 = vadd.f32 %v332_v61, %v774_v47 }
  0xe4   :  { %421 = vst [vmem:[#allocation2 + $0x10] sm:$0xff] %v235_v58  ;;  %453 = vst [vmem:[#allocation2 + $0x110] sm:$0xff] %v331_v59 }
  0xe5   :  { %422 = vst [vmem:[#allocation2 + $0x18] sm:$0xff] %v237_v62  ;;  %454 = vst [vmem:[#allocation2 + $0x118] sm:$0xff] %v333_v63  ;;  %v240_v0 = vpop.f32.mrb[4].mxu0  ;;  %v336_v1 = vpop.f32.mrb[4].mxu1 }
  0xe6   :  { %v241_v2 = vadd.f32 %v240_v0, %v772_v46  ;;  %v337_v3 = vadd.f32 %v336_v1, %v772_v46  ;;  %v242_v4 = vpop.f32.mrb[5].mxu0  ;;  %v338_v5 = vpop.f32.mrb[5].mxu1 }
  0xe7   :  { %v243_v6 = vadd.f32 %v242_v4, %v774_v47  ;;  %v339_v7 = vadd.f32 %v338_v5, %v774_v47 }
  0xe8   :  { %423 = vst [vmem:[#allocation2 + $0x20] sm:$0xff] %v241_v2  ;;  %455 = vst [vmem:[#allocation2 + $0x120] sm:$0xff] %v337_v3 }
  0xe9   :  { %424 = vst [vmem:[#allocation2 + $0x28] sm:$0xff] %v243_v6  ;;  %456 = vst [vmem:[#allocation2 + $0x128] sm:$0xff] %v339_v7  ;;  %v246_v8 = vpop.f32.mrb[6].mxu0  ;;  %v342_v9 = vpop.f32.mrb[6].mxu1 }
  0xea   :  { %v247_v10 = vadd.f32 %v246_v8, %v772_v46  ;;  %v343_v11 = vadd.f32 %v342_v9, %v772_v46  ;;  %v248_v12 = vpop.f32.mrb[7].mxu0  ;;  %v344_v13 = vpop.f32.mrb[7].mxu1 }
  0xeb   :  { %v249_v14 = vadd.f32 %v248_v12, %v774_v47  ;;  %v345_v15 = vadd.f32 %v344_v13, %v774_v47 }
  0xec   :  { %425 = vst [vmem:[#allocation2 + $0x30] sm:$0xff] %v247_v10  ;;  %457 = vst [vmem:[#allocation2 + $0x130] sm:$0xff] %v343_v11 }
  0xed   :  { %426 = vst [vmem:[#allocation2 + $0x38] sm:$0xff] %v249_v14  ;;  %458 = vst [vmem:[#allocation2 + $0x138] sm:$0xff] %v345_v15  ;;  %v252_v16 = vpop.f32.mrb[8].mxu0  ;;  %v348_v17 = vpop.f32.mrb[8].mxu1 }
  0xee   :  { %v253_v18 = vadd.f32 %v252_v16, %v772_v46  ;;  %v349_v19 = vadd.f32 %v348_v17, %v772_v46  ;;  %v254_v20 = vpop.f32.mrb[9].mxu0  ;;  %v350_v21 = vpop.f32.mrb[9].mxu1 }
  0xef   :  { %v255_v22 = vadd.f32 %v254_v20, %v774_v47  ;;  %v351_v23 = vadd.f32 %v350_v21, %v774_v47 }
  0xf0   :  { %427 = vst [vmem:[#allocation2 + $0x40] sm:$0xff] %v253_v18  ;;  %459 = vst [vmem:[#allocation2 + $0x140] sm:$0xff] %v349_v19 }
  0xf1   :  { %428 = vst [vmem:[#allocation2 + $0x48] sm:$0xff] %v255_v22  ;;  %460 = vst [vmem:[#allocation2 + $0x148] sm:$0xff] %v351_v23  ;;  %v258_v24 = vpop.f32.mrb[10].mxu0  ;;  %v354_v25 = vpop.f32.mrb[10].mxu1 }
  0xf2   :  { %v259_v26 = vadd.f32 %v258_v24, %v772_v46  ;;  %v355_v27 = vadd.f32 %v354_v25, %v772_v46  ;;  %v260_v28 = vpop.f32.mrb[11].mxu0  ;;  %v356_v29 = vpop.f32.mrb[11].mxu1 }
  0xf3   :  { %v261_v30 = vadd.f32 %v260_v28, %v774_v47  ;;  %v357_v31 = vadd.f32 %v356_v29, %v774_v47 }
  0xf4   :  { %429 = vst [vmem:[#allocation2 + $0x50] sm:$0xff] %v259_v26  ;;  %461 = vst [vmem:[#allocation2 + $0x150] sm:$0xff] %v355_v27 }
  0xf5   :  { %430 = vst [vmem:[#allocation2 + $0x58] sm:$0xff] %v261_v30  ;;  %462 = vst [vmem:[#allocation2 + $0x158] sm:$0xff] %v357_v31  ;;  %v264_v32 = vpop.f32.mrb[12].mxu0  ;;  %v360_v33 = vpop.f32.mrb[12].mxu1 }
  0xf6   :  { %v265_v34 = vadd.f32 %v264_v32, %v772_v46  ;;  %v361_v35 = vadd.f32 %v360_v33, %v772_v46  ;;  %v266_v36 = vpop.f32.mrb[13].mxu0  ;;  %v362_v37 = vpop.f32.mrb[13].mxu1 }
  0xf7   :  { %v267_v38 = vadd.f32 %v266_v36, %v774_v47  ;;  %v363_v39 = vadd.f32 %v362_v37, %v774_v47 }
  0xf8   :  { %431 = vst [vmem:[#allocation2 + $0x60] sm:$0xff] %v265_v34  ;;  %463 = vst [vmem:[#allocation2 + $0x160] sm:$0xff] %v361_v35 }
  0xf9   :  { %432 = vst [vmem:[#allocation2 + $0x68] sm:$0xff] %v267_v38  ;;  %464 = vst [vmem:[#allocation2 + $0x168] sm:$0xff] %v363_v39  ;;  %v270_v40 = vpop.f32.mrb[14].mxu0  ;;  %v366_v41 = vpop.f32.mrb[14].mxu1 }
  0xfa   :  { %v271_v42 = vadd.f32 %v270_v40, %v772_v46  ;;  %v367_v43 = vadd.f32 %v366_v41, %v772_v46  ;;  %v272_v44 = vpop.f32.mrb[15].mxu0  ;;  %v368_v45 = vpop.f32.mrb[15].mxu1 }
  0xfb   :  { %v273_v48 = vadd.f32 %v272_v44, %v774_v47  ;;  %v369_v49 = vadd.f32 %v368_v45, %v774_v47 }
  0xfc   :  { %433 = vst [vmem:[#allocation2 + $0x70] sm:$0xff] %v271_v42  ;;  %465 = vst [vmem:[#allocation2 + $0x170] sm:$0xff] %v367_v43 }
  0xfd   :  { %434 = vst [vmem:[#allocation2 + $0x78] sm:$0xff] %v273_v48  ;;  %466 = vst [vmem:[#allocation2 + $0x178] sm:$0xff] %v369_v49  ;;  %v276_v50 = vpop.f32.mrb[16].mxu0  ;;  %v372_v51 = vpop.f32.mrb[16].mxu1 }
  0xfe   :  { %v277_v52 = vadd.f32 %v276_v50, %v772_v46  ;;  %v373_v53 = vadd.f32 %v372_v51, %v772_v46  ;;  %v278_v54 = vpop.f32.mrb[17].mxu0  ;;  %v374_v55 = vpop.f32.mrb[17].mxu1 }
  0xff   :  { %v279_v56 = vadd.f32 %v278_v54, %v774_v47  ;;  %v375_v57 = vadd.f32 %v374_v55, %v774_v47 }
 0x100   :  { %435 = vst [vmem:[#allocation2 + $0x80] sm:$0xff] %v277_v52  ;;  %467 = vst [vmem:[#allocation2 + $0x180] sm:$0xff] %v373_v53 }
 0x101   :  { %436 = vst [vmem:[#allocation2 + $0x88] sm:$0xff] %v279_v56  ;;  %468 = vst [vmem:[#allocation2 + $0x188] sm:$0xff] %v375_v57  ;;  %v282_v58 = vpop.f32.mrb[18].mxu0  ;;  %v378_v59 = vpop.f32.mrb[18].mxu1 }
 0x102   :  { %v283_v60 = vadd.f32 %v282_v58, %v772_v46  ;;  %v379_v61 = vadd.f32 %v378_v59, %v772_v46  ;;  %v284_v62 = vpop.f32.mrb[19].mxu0  ;;  %v380_v63 = vpop.f32.mrb[19].mxu1 }
 0x103   :  { %v285_v0 = vadd.f32 %v284_v62, %v774_v47  ;;  %v381_v1 = vadd.f32 %v380_v63, %v774_v47 }
 0x104   :  { %437 = vst [vmem:[#allocation2 + $0x90] sm:$0xff] %v283_v60  ;;  %469 = vst [vmem:[#allocation2 + $0x190] sm:$0xff] %v379_v61 }
 0x105   :  { %438 = vst [vmem:[#allocation2 + $0x98] sm:$0xff] %v285_v0  ;;  %470 = vst [vmem:[#allocation2 + $0x198] sm:$0xff] %v381_v1  ;;  %v288_v2 = vpop.f32.mrb[20].mxu0  ;;  %v384_v3 = vpop.f32.mrb[20].mxu1 }
 0x106   :  { %v289_v4 = vadd.f32 %v288_v2, %v772_v46  ;;  %v385_v5 = vadd.f32 %v384_v3, %v772_v46  ;;  %v290_v6 = vpop.f32.mrb[21].mxu0  ;;  %v386_v7 = vpop.f32.mrb[21].mxu1 }
 0x107   :  { %v291_v8 = vadd.f32 %v290_v6, %v774_v47  ;;  %v387_v9 = vadd.f32 %v386_v7, %v774_v47 }
 0x108   :  { %439 = vst [vmem:[#allocation2 + $0xa0] sm:$0xff] %v289_v4  ;;  %471 = vst [vmem:[#allocation2 + $0x1a0] sm:$0xff] %v385_v5 }
 0x109   :  { %440 = vst [vmem:[#allocation2 + $0xa8] sm:$0xff] %v291_v8  ;;  %472 = vst [vmem:[#allocation2 + $0x1a8] sm:$0xff] %v387_v9  ;;  %v294_v10 = vpop.f32.mrb[22].mxu0  ;;  %v390_v11 = vpop.f32.mrb[22].mxu1 }
 0x10a   :  { %v295_v12 = vadd.f32 %v294_v10, %v772_v46  ;;  %v391_v13 = vadd.f32 %v390_v11, %v772_v46  ;;  %v296_v14 = vpop.f32.mrb[23].mxu0  ;;  %v392_v15 = vpop.f32.mrb[23].mxu1 }
 0x10b   :  { %v297_v16 = vadd.f32 %v296_v14, %v774_v47  ;;  %v393_v17 = vadd.f32 %v392_v15, %v774_v47 }
 0x10c   :  { %441 = vst [vmem:[#allocation2 + $0xb0] sm:$0xff] %v295_v12  ;;  %473 = vst [vmem:[#allocation2 + $0x1b0] sm:$0xff] %v391_v13 }
 0x10d   :  { %442 = vst [vmem:[#allocation2 + $0xb8] sm:$0xff] %v297_v16  ;;  %474 = vst [vmem:[#allocation2 + $0x1b8] sm:$0xff] %v393_v17  ;;  %v300_v18 = vpop.f32.mrb[24].mxu0  ;;  %v396_v19 = vpop.f32.mrb[24].mxu1 }
 0x10e   :  { %v301_v20 = vadd.f32 %v300_v18, %v772_v46  ;;  %v397_v21 = vadd.f32 %v396_v19, %v772_v46  ;;  %v302_v22 = vpop.f32.mrb[25].mxu0  ;;  %v398_v23 = vpop.f32.mrb[25].mxu1 }
 0x10f   :  { %v303_v24 = vadd.f32 %v302_v22, %v774_v47  ;;  %v399_v25 = vadd.f32 %v398_v23, %v774_v47 }
 0x110   :  { %443 = vst [vmem:[#allocation2 + $0xc0] sm:$0xff] %v301_v20  ;;  %475 = vst [vmem:[#allocation2 + $0x1c0] sm:$0xff] %v397_v21 }
 0x111   :  { %444 = vst [vmem:[#allocation2 + $0xc8] sm:$0xff] %v303_v24  ;;  %476 = vst [vmem:[#allocation2 + $0x1c8] sm:$0xff] %v399_v25  ;;  %v306_v26 = vpop.f32.mrb[26].mxu0  ;;  %v402_v27 = vpop.f32.mrb[26].mxu1 }
 0x112   :  { %v307_v28 = vadd.f32 %v306_v26, %v772_v46  ;;  %v403_v29 = vadd.f32 %v402_v27, %v772_v46  ;;  %v308_v30 = vpop.f32.mrb[27].mxu0  ;;  %v404_v31 = vpop.f32.mrb[27].mxu1 }
 0x113   :  { %v309_v32 = vadd.f32 %v308_v30, %v774_v47  ;;  %v405_v33 = vadd.f32 %v404_v31, %v774_v47 }
 0x114   :  { %445 = vst [vmem:[#allocation2 + $0xd0] sm:$0xff] %v307_v28  ;;  %477 = vst [vmem:[#allocation2 + $0x1d0] sm:$0xff] %v403_v29 }
 0x115   :  { %446 = vst [vmem:[#allocation2 + $0xd8] sm:$0xff] %v309_v32  ;;  %478 = vst [vmem:[#allocation2 + $0x1d8] sm:$0xff] %v405_v33  ;;  %v312_v34 = vpop.f32.mrb[28].mxu0  ;;  %v408_v35 = vpop.f32.mrb[28].mxu1 }
 0x116   :  { %v313_v36 = vadd.f32 %v312_v34, %v772_v46  ;;  %v409_v37 = vadd.f32 %v408_v35, %v772_v46  ;;  %v314_v38 = vpop.f32.mrb[29].mxu0  ;;  %v410_v39 = vpop.f32.mrb[29].mxu1 }
 0x117   :  { %v315_v40 = vadd.f32 %v314_v38, %v774_v47  ;;  %v411_v41 = vadd.f32 %v410_v39, %v774_v47 }
 0x118   :  { %447 = vst [vmem:[#allocation2 + $0xe0] sm:$0xff] %v313_v36  ;;  %479 = vst [vmem:[#allocation2 + $0x1e0] sm:$0xff] %v409_v37 }
 0x119   :  { %448 = vst [vmem:[#allocation2 + $0xe8] sm:$0xff] %v315_v40  ;;  %480 = vst [vmem:[#allocation2 + $0x1e8] sm:$0xff] %v411_v41  ;;  %v318_v42 = vpop.f32.mrb[30].mxu0  ;;  %v414_v43 = vpop.f32.mrb[30].mxu1 }
 0x11a   :  { %v319_v44 = vadd.f32 %v318_v42, %v772_v46  ;;  %v415_v45 = vadd.f32 %v414_v43, %v772_v46  ;;  %v320_v48 = vpop.f32.mrb[31].mxu0  ;;  %v416_v49 = vpop.f32.mrb[31].mxu1 }
 0x11b   :  { %v321_v50 = vadd.f32 %v320_v48, %v774_v47  ;;  %v417_v51 = vadd.f32 %v416_v49, %v774_v47 }
 0x11c   :  { %449 = vst [vmem:[#allocation2 + $0xf0] sm:$0xff] %v319_v44  ;;  %481 = vst [vmem:[#allocation2 + $0x1f0] sm:$0xff] %v415_v45 }
 0x11d   :  { %450 = vst [vmem:[#allocation2 + $0xf8] sm:$0xff] %v321_v50  ;;  %482 = vst [vmem:[#allocation2 + $0x1f8] sm:$0xff] %v417_v51 }
 0x11e   :  { %554 = shalt.err (!%p551_p4)
}
 0x11f   :  { %s555_s9 = scalar_lea.hbm %s855_s3, 8192 }
 0x120   :  { %p556_p5 = scmp.ne.s32.totalorder %s855_s3, %s555_s9  ;;  %p559_p6 = scmp.lt.u32.totalorder %s555_s9, %s855_s3 }
 0x122   :  { %p561_p7 = pnand %p559_p6, %p556_p5 }
 0x124   :  { %564 = shalt.err (!%p561_p7)
}
 0x125   :  { %s569_s14 = smov 256   ;;  %s570_s15 = smov 16  }
 0x126   :  { %494 = dma.vmem_to_hbm [thread:$0]  %s489_s2, 8192, %s855_s3, [#allocation3], %s569_s14, %s569_s14, %s570_s15  }
 0x127   :  { %565 = dma.done.wait [#allocation3], 8192  }
 0x128   :  { %566 = vsyncadd [#allocation3], 4294959104 }
 0x129   :  { %498 = vsyncpa [#allocation3], 1 }

</bundles_post_ra>
